<compile_context>
chip_gen: v6e
topology: v6e:2x2x1
jax: 0.10.0
libtpu: 0.0.40
codegen_flags: <defaults>
</compile_context>

<pallas_src>
import math
import functools

import jax
import jax.numpy as jnp
from jax.experimental import pallas as pl
from jax.experimental.pallas import tpu as pltpu


def make_pe_table(d_model: int, max_len: int = 5000) -> jnp.ndarray:
    """Sinusoidal positional-encoding buffer, shape (max_len, d_model), float32."""
    position = jnp.arange(0, max_len, dtype=jnp.float32)[:, None]             # (L, 1)
    div_term = jnp.exp(
        jnp.arange(0, d_model, 2, dtype=jnp.float32) * -(math.log(10000.0) / d_model)
    )                                                                          # (D/2,)
    angles = position * div_term                                               # (L, D/2)
    pe = jnp.zeros((max_len, d_model), dtype=jnp.float32)
    pe = pe.at[:, 0::2].set(jnp.sin(angles))
    pe = pe.at[:, 1::2].set(jnp.cos(angles))
    return pe


def _pos_enc_kernel(seed_ref, x_ref, pe_ref, o_ref, *, dropout_p: float,
                    training: bool, tb: int, tl: int, total_lanes: int):
    # x_ref: (TB, TL)   pe_ref: (1, TL) f32 -> implicit row broadcast.
    # Add in float32 (matches the PyTorch f32 buffer), cast only at the store.
    y = x_ref[...].astype(jnp.float32) + pe_ref[...]

    if training and dropout_p > 0.0:
        # Counter-based hash dropout: unique global element index mixed with
        # the seed, murmur3-style finalizer -> uniform uint32 bits.  Works on
        # TPU and in interpret mode (no Mosaic-only PRNG primitives).
        c = pl.program_id(0)   # lane-tile index (outer)
        b = pl.program_id(1)   # row-tile index (inner)
        rows = jax.lax.broadcasted_iota(jnp.uint32, y.shape, 0)
        cols = jax.lax.broadcasted_iota(jnp.uint32, y.shape, 1)
        rows = rows + (b * tb).astype(jnp.uint32)
        cols = cols + (c * tl).astype(jnp.uint32)
        idx = rows * jnp.uint32(total_lanes & 0xFFFFFFFF) + cols

        seed_u = seed_ref[0].astype(jnp.uint32)
        h = idx ^ (seed_u * jnp.uint32(0x9E3779B9))
        h = h ^ (h >> 16)
        h = h * jnp.uint32(0x85EBCA6B)
        h = h ^ (h >> 13)
        h = h * jnp.uint32(0xC2B2AE35)
        h = h ^ (h >> 16)

        # Integer-threshold compare: keep iff bits >= p * 2^32 (no float convert).
        threshold = jnp.uint32(min(int(dropout_p * (1 << 32)), (1 << 32) - 1))
        keep = h >= threshold
        scale = jnp.float32(1.0 / (1.0 - dropout_p))
        y = jnp.where(keep, y * scale, jnp.float32(0.0))

    o_ref[...] = y.astype(o_ref.dtype)


def _cdiv(a: int, b: int) -> int:
    return -(-a // b)


def _vmem_capacity_bytes(default: int = 64 << 20) -> int:
    """Device VMEM capacity; conservative (v7x per-TC) fallback off-TPU."""
    try:
        info_fn = getattr(pltpu, "get_tpu_info", None)
        if info_fn is None:
            return default
        return int(info_fn().vmem_capacity_bytes)
    except Exception:
        return default


def positional_encoding(x: jnp.ndarray, pe_table: jnp.ndarray, *,
                        dropout_p: float = 0.1, training: bool = False,
                        seed: int = 0) -> jnp.ndarray:
    """Pallas forward of PositionalEncoding. x: (B, S, D). Returns (B, S, D)."""
    B, S, D = x.shape
    L = S * D

    # Lane-dense flatten: (B, S, D) -> (B, S*D); pe[:S] stays float32 -> (1, S*D).
    x2 = x.reshape(B, L)
    pe2 = pe_table[:S, :].reshape(1, L)                       # float32
    seed_arr = jnp.array([seed], dtype=jnp.int32)

    # ---- Tile selection (per-generation byte budget) -----------------------
    itemsize = jnp.dtype(x.dtype).itemsize
    row_align = {4: 8, 2: 16, 1: 32}.get(itemsize, 8)

    vmem_cap = _vmem_capacity_bytes()
    # Working set ~ 2*(x tile) + 2*(out tile) + pe row; target ~1/3 of VMEM.
    tile_budget = max(1 << 20, min(8 << 20, vmem_cap // 12))
    vmem_limit = int(min(vmem_cap * 3 // 4, 96 << 20))

    row_bytes = L * itemsize
    if row_bytes <= tile_budget:
        # Preferred path: full flattened rows (one contiguous DMA per tile,
        # pe row DMA'd exactly once for the whole kernel).
        TL = L
        TB = min(B, max(1, tile_budget // row_bytes))
        if TB < B:
            TB = max(row_align, (TB // row_align) * row_align)
            if TB >= B:
                TB = B
    else:
        # Fallback for huge rows: 128-aligned lane tiles, minimal row tile.
        TB = min(B, row_align)
        if TB < B:
            TB = row_align
        max_lanes = max(128, (tile_budget // (max(TB, 1) * itemsize)) // 128 * 128)
        TL = min(max_lanes, ((L + 127) // 128) * 128)
        if TL >= L:
            TL = L

    n_c = _cdiv(L, TL)
    n_b = _cdiv(B, TB)
    # v7x megacore: make sure there are >= 2 shardable grid steps when possible.
    if n_c * n_b == 1 and B >= 2 * row_align:
        TB = _cdiv(_cdiv(B, 2), row_align) * row_align
        n_b = _cdiv(B, TB)

    grid = (n_c, n_b)   # lane-tile axis OUTER (pe resident), row-tile axis INNER

    kernel = functools.partial(_pos_enc_kernel, dropout_p=dropout_p,
                               training=training, tb=TB, tl=TL, total_lanes=L)

    out2 = pl.pallas_call(
        kernel,
        out_shape=jax.ShapeDtypeStruct((B, L), x.dtype),
        grid_spec=pltpu.PrefetchScalarGridSpec(
            num_scalar_prefetch=1,      # dropout seed lives in SMEM
            grid=grid,
            in_specs=[
                # x tile: (TB rows, TL lanes); ragged edges masked by Pallas.
                pl.BlockSpec((TB, TL), lambda c, b, seed: (b, c)),
                # pe tile: depends only on the OUTER lane-tile index ->
                # stays resident across all inner row steps (no re-DMA).
                pl.BlockSpec((1, TL), lambda c, b, seed: (0, c)),
            ],
            out_specs=pl.BlockSpec((TB, TL), lambda c, b, seed: (b, c)),
        ),
        compiler_params=pltpu.CompilerParams(
            # No reduction axis -> both parallel (megacore sharding on v7x).
            dimension_semantics=("parallel", "parallel"),
            vmem_limit_bytes=vmem_limit),
    )(seed_arr, x2, pe2)

    return out2.reshape(B, S, D)


if __name__ == "__main__":
    # Small shapes consistent with the module: batch=2, seq=8, d_model=32.
    B, S, D = 2, 8, 32
    dropout_p = 0.1
    key = jax.random.PRNGKey(0)
    x = jax.random.normal(key, (B, S, D), dtype=jnp.float32)

    pe_table = make_pe_table(d_model=D, max_len=5000)
    ref = x + pe_table[None, :S, :]

    # Eval-mode forward (dropout = identity) -> deterministic reference check.
    out = positional_encoding(x, pe_table, dropout_p=dropout_p, training=False)
    out = jax.block_until_ready(out)
    assert jnp.allclose(out, ref, atol=1e-6), "mismatch vs reference (eval)"

    # Training (dropout) path: kept entries must equal ref / (1 - p), dropped are 0.
    out_train = positional_encoding(x, pe_table, dropout_p=dropout_p,
                                    training=True, seed=123)
    out_train = jax.block_until_ready(out_train)
    assert out_train.shape == (B, S, D)
    kept = out_train != 0
    assert jnp.allclose(jnp.where(kept, out_train, 0.0),
                        jnp.where(kept, ref / (1.0 - dropout_p), 0.0),
                        atol=1e-5), "mismatch vs reference (train/kept)"

    print("KERNEL_OK")
</pallas_src>

<mosaic_0001>
module attributes {stable_mosaic.version = 11 : i64} {
  func.func @_pos_enc_kernel(%arg0: i32, %arg1: i32, %arg2: memref<1xi32, #tpu.memory_space<smem>>, %arg3: memref<2x256xf32, #tpu.memory_space<vmem>>, %arg4: memref<1x256xf32, #tpu.memory_space<vmem>>, %arg5: memref<2x256xf32, #tpu.memory_space<vmem>>) attributes {dimension_semantics = [#tpu.dimension_semantics<parallel>, #tpu.dimension_semantics<parallel>], iteration_bounds = array<i64: 1, 1>, scalar_prefetch = 1 : i64, scratch_operands = 0 : i64, tpu.core_type = #tpu.core_type<tc>, window_params = [{transform_indices = @transform_0, window_bounds = array<i64: 2, 256>}, {transform_indices = @transform_1, window_bounds = array<i64: 1, 256>}, {transform_indices = @transform_2, window_bounds = array<i64: 2, 256>}]} {
    %c0 = arith.constant 0 : index
    %c0_0 = arith.constant 0 : index
    %0 = vector.load %arg3[%c0, %c0_0] : memref<2x256xf32, #tpu.memory_space<vmem>>, vector<2x256xf32>
    %c0_1 = arith.constant 0 : index
    %c0_2 = arith.constant 0 : index
    %1 = vector.load %arg4[%c0_1, %c0_2] : memref<1x256xf32, #tpu.memory_space<vmem>>, vector<1x256xf32>
    %2 = vector.broadcast %1 : vector<1x256xf32> to vector<2x256xf32>
    %3 = arith.addf %0, %2 : vector<2x256xf32>
    %c0_3 = arith.constant 0 : index
    %c0_4 = arith.constant 0 : index
    %4 = vector.load %arg5[%c0_3, %c0_4] : memref<2x256xf32, #tpu.memory_space<vmem>>, vector<2x256xf32>
    tpu.vector_store %arg5[%c0_3, %c0_4], %3 {strides = array<i32>} : memref<2x256xf32, #tpu.memory_space<vmem>>, vector<2x256xf32>,
    return
  }
  func.func @transform_0(%arg0: i32, %arg1: i32, %arg2: memref<1xi32, #tpu.memory_space<smem>>) -> (i32, i32) {
    %c0_i32 = arith.constant 0 : i32
    return %arg1, %arg0 : i32, i32
  }
  func.func @transform_1(%arg0: i32, %arg1: i32, %arg2: memref<1xi32, #tpu.memory_space<smem>>) -> (i32, i32) {
    %c0_i32 = arith.constant 0 : i32
    %c0_i32_0 = arith.constant 0 : i32
    return %c0_i32, %arg0 : i32, i32
  }
  func.func @transform_2(%arg0: i32, %arg1: i32, %arg2: memref<1xi32, #tpu.memory_space<smem>>) -> (i32, i32) {
    %c0_i32 = arith.constant 0 : i32
    return %arg1, %arg0 : i32, i32
  }
}

</mosaic_0001>

<bundles_post_ra>
// kernel: tpu_custom_call.1
= control target key start
LH: loop header
LB: loop body
LE: loop exit
PB: predicated region body
PF: predicated region fallthrough
CT: control target
= control target key end

     0   :  { %9 = vsyncpa [#allocation5], 0  ;;  %s142_s0 = inlined_call_operand.<no memory space> [shape: s32[1], index: 0, kind: input, shape index: {}]   ;;  %s143_s1 = inlined_call_operand.hbm [shape: f32[2,256], index: 1, kind: input, shape index: {}]   ;;  %s144_s2 = inlined_call_operand.vmem [shape: f32[1,256], index: 2, kind: input, shape index: {}]   ;;  %s145_s3 = inlined_call_operand.hbm [shape: f32[2,256], index: 3, kind: output, shape index: {}]  }
   0x1   :  { %10 = vsyncpa [#allocation6], 0  ;;  %s110_s12 = smov [#allocation4]  }
   0x2   :  { %s17_s13 = sshll.u32 %s110_s12, 4  ;;  %s18_s13 = int_to_ptr.vmem [resolvable:$true] %s17_s13 }
   0x3   :  { %s74_s14 = scalar_lea.vmem %s18_s13, 64  ;;  %p79_p1 = scmp.lt.s32.totalorder %s18_s13, %s18_s13 }
   0x4   :  { %p75_p0 = scmp.ne.s32.totalorder %s18_s13, %s74_s14  ;;  %p80_p2 = scmp.lt.s32.totalorder %s74_s14, %s74_s14 }
   0x6   :  { %p81_p3 = por %p80_p2, %p79_p1 }
   0x8   :  { %p82_p4 = pnand %p81_p3, %p75_p0 }
   0xa   :  { %85 = shalt.err (!%p82_p4)
}
   0xb   :  { %20 = dma.hbm_to_vmem [thread:$0]  %s143_s1, 64, %s18_s13, [#allocation5]  }
   0xc   :  { %106 = dma.done.wait [#allocation5], 64  }
   0xd   :  { %107 = vsyncadd [#allocation5], 4294967232  ;;  %v29_v0 = vlaneseq  ;;  %v111_v1 = vmov 1983009808   ;;  %v27_v7 = vld [vmem:[%s144_s2] sm:$0x3] }
   0xe   :  { %v39_v2 = vunpack.c.l.s4 %v111_v1  ;;  %v26_v12 = vld [vmem:[#allocation4] sm:$0xf]  ;;  %s112_s18 = smov [#allocation7]  }
   0xf   :  { %v30_v3 = vshrl.u32 %v29_v0, 7  ;;  %s54_s1 = sshll.u32 %s112_s18, 4  ;;  %s55_s1 = int_to_ptr.vmem [resolvable:$true] %s54_s1 }
  0x10   :  { %v40_v6 = vunpack.c.0.s8 %v39_v2  ;;  %s86_s19 = scalar_lea.vmem %s55_s1, 64  ;;  %p91_p6 = scmp.lt.s32.totalorder %s55_s1, %s55_s1 }
  0x11   :  { %v31_v4 = vsub.s32 0, %v30_v3  ;;  %v35_v5 = vsub.s32 1, %v30_v3  ;;  %p87_p5 = scmp.ne.s32.totalorder %s55_s1, %s86_s19  ;;  %p92_p7 = scmp.lt.s32.totalorder %s86_s19, %s86_s19 }
  0x12   :  { %v43_v10 = vsub.s32 %v40_v6, %v30_v3 }
  0x13   :  { %v32_v8 = vrot.slane %v27_v7, %v31_v4  ;;  %v36_v9 = vrot.slane %v27_v7, %v35_v5  ;;  %p93_p8 = por %p92_p7, %p91_p6 }
  0x15   :  { %v37_v11 = vcombine.low %v32_v8, %v36_v9  ;;  %p94_p9 = pnand %p93_p8, %p87_p5 }
  0x17   :  { %v44_v13 = vrot.slane %v37_v11, %v43_v10 }
  0x19   :  { %v46_v14 = vadd.f32 %v44_v13, %v26_v12 }
  0x1b   :  { %47 = vst [vmem:[#allocation7] sm:$0xf] %v46_v14 }
  0x1c   :  { %97 = shalt.err (!%p94_p9)
}
  0x1d   :  { %57 = dma.vmem_to_hbm [thread:$0]  %s55_s1, 64, %s145_s3, [#allocation6]  }
  0x1e   :  { %108 = dma.done.wait [#allocation6], 64  }
  0x1f   :  { %109 = vsyncadd [#allocation6], 4294967232 }
  0x20   :  { %61 = vsyncpa [#allocation5], 1 }
  0x21   :  { %62 = vsyncpa [#allocation6], 1 }

</bundles_post_ra>
